<compile_context>
chip_gen: v7x
topology: tpu7x:2x2x1
jax: 0.10.0
libtpu: 0.0.40
codegen_flags: <defaults>
</compile_context>

<pallas_src>
import math

import jax
import jax.numpy as jnp
from jax.experimental import pallas as pl
from jax.experimental.pallas import tpu as pltpu


def _build_pe(d_model: int, max_len: int) -> jnp.ndarray:
    """Sinusoidal positional-encoding table, shape (max_len, d_model). Even d_model
    (same implicit assumption as the PyTorch module)."""
    position = jnp.arange(max_len, dtype=jnp.float32)[:, None]
    div_term = jnp.exp(
        jnp.arange(0, d_model, 2, dtype=jnp.float32) * (-math.log(10000.0) / d_model)
    )
    pe = jnp.zeros((max_len, d_model), dtype=jnp.float32)
    pe = pe.at[:, 0::2].set(jnp.sin(position * div_term))
    pe = pe.at[:, 1::2].set(jnp.cos(position * div_term))
    return pe


# --------------------------------------------------------------------------------------
# Fused: out[b, s, :] = emb_table[tok[b, s], :] + pe[s, :]
# --------------------------------------------------------------------------------------
def embed_positional_encoding_forward(
    tok: jnp.ndarray,        # (B, S) int token ids
    emb_table: jnp.ndarray,  # (V, D) embedding table
    pe: jnp.ndarray,         # (max_len, D) PE table (float32)
    *,
    tokens_per_step: int = 16,
) -> jnp.ndarray:
    B, S = tok.shape
    V, D = emb_table.shape
    dtype = emb_table.dtype

    tok = tok.astype(jnp.int32)
    pe_slice = pe[:S].astype(dtype)                     # (S, D), cast once in wrapper

    # Tokens gathered per grid step: either the full sequence (always a legal block)
    # or a multiple of 8 (sublane-aligned block); ragged tails are clamped in-kernel.
    if S <= tokens_per_step:
        ts = S
    else:
        ts = max(8, (tokens_per_step // 8) * 8)
    n_sc = pl.cdiv(S, ts)

    def kernel(tok_ref, emb_hbm, pe_ref, o_ref, buf, sems):
        b = pl.program_id(0)
        s0 = pl.program_id(1) * ts
        # Issue all row DMAs first (they overlap), then wait, then one fused add+store.
        copies = []
        for t in range(ts):                              # static unroll, ts is small
            s_idx = jnp.minimum(s0 + t, S - 1)           # clamp ragged tail
            row = tok_ref[b, s_idx]                      # scalar read from SMEM
            cp = pltpu.make_async_copy(
                emb_hbm.at[pl.ds(row, 1)],               # (1, D) row in HBM
                buf.at[pl.ds(t, 1)],                     # (1, D) row in VMEM scratch
                sems.at[t],
            )
            cp.start()
            copies.append(cp)
        for cp in copies:
            cp.wait()
        o_ref[0] = buf[...] + pe_ref[...]                # (ts, D) VPU add, one store

    grid_spec = pltpu.PrefetchScalarGridSpec(
        num_scalar_prefetch=1,                           # tok ids -> SMEM
        grid=(B, n_sc),
        in_specs=[
            pl.BlockSpec(memory_space=pl.ANY),           # embedding table stays in HBM
            pl.BlockSpec((ts, D), lambda b, sc, tok_ref: (sc, 0)),
        ],
        out_specs=pl.BlockSpec((1, ts, D), lambda b, sc, tok_ref: (b, sc, 0)),
        scratch_shapes=[
            pltpu.VMEM((ts, D), dtype),
            pltpu.SemaphoreType.DMA((ts,)),
        ],
    )

    return pl.pallas_call(
        kernel,
        out_shape=jax.ShapeDtypeStruct((B, S, D), dtype),
        grid_spec=grid_spec,
        compiler_params=pltpu.CompilerParams(
            dimension_semantics=("parallel", "arbitrary"),
        ),
    )(tok, emb_table, pe_slice)


# --------------------------------------------------------------------------------------
# Standalone PE add (activation already materialized): out = x + pe[:S]
# --------------------------------------------------------------------------------------
def _pe_add_kernel(x_ref, pe_ref, o_ref):
    # x_ref/o_ref: (tb, tp, N) block; pe_ref: (tp, N) block broadcast over batch chunk.
    o_ref[...] = x_ref[...] + pe_ref[...]


def positional_encoding_forward(
    x: jnp.ndarray,
    pe: jnp.ndarray,
    *,
    target_block_bytes: int = 2 * 1024 * 1024,
) -> jnp.ndarray:
    """x: (B, S, D); pe: (max_len, D). Returns x + pe[:S] (dropout = identity)."""
    B, S, D = x.shape
    itemsize = x.dtype.itemsize

    pe_slice = pe[:S].astype(x.dtype)                    # (S, D)

    # Lane-dense re-layout: present (S, D) as (P, 128) rows when possible so stores are
    # full 128-lane vst instead of masked vst.msk (matters for small D like 32).
    if (S * D) % 128 == 0:
        P, N = (S * D) // 128, 128
    else:
        P, N = S, D
    x_r = x.reshape(B, P, N)
    pe_r = pe_slice.reshape(P, N)

    # Big blocks (~target_block_bytes) to amortize per-step overhead.
    row_bytes = N * itemsize
    tp_cap = max(1, target_block_bytes // row_bytes)
    if tp_cap >= P or P <= 8:
        tp = P
    elif tp_cap >= 8:
        tp = (tp_cap // 8) * 8
    else:
        tp = 8
    tb = int(min(B, max(1, target_block_bytes // (tp * row_bytes))))

    grid = (pl.cdiv(B, tb), pl.cdiv(P, tp))

    # Explicit VMEM budget: double-buffered x + out blocks + pe block, capped so the
    # same config fits v7x (64 MiB physical) as well as v5e/v6e (128 MiB).
    block_bytes = tb * tp * N * itemsize
    pe_block_bytes = tp * N * itemsize
    needed = 2 * (2 * block_bytes) + 2 * pe_block_bytes
    vmem_limit_bytes = int(min(max(needed + (8 << 20), 16 << 20), 48 << 20))

    out_r = pl.pallas_call(
        _pe_add_kernel,
        out_shape=jax.ShapeDtypeStruct((B, P, N), x.dtype),
        grid=grid,
        in_specs=[
            pl.BlockSpec((tb, tp, N), lambda i, j: (i, j, 0)),
            pl.BlockSpec((tp, N), lambda i, j: (j, 0)),
        ],
        out_specs=pl.BlockSpec((tb, tp, N), lambda i, j: (i, j, 0)),
        compiler_params=pltpu.CompilerParams(
            dimension_semantics=("parallel", "parallel"),
            vmem_limit_bytes=vmem_limit_bytes,
        ),
    )(x_r, pe_r)

    return out_r.reshape(B, S, D)


if __name__ == "__main__":
    MAX_LEN = 500

    # 1) Fused embedding gather + PE at the module's small demo scale: B=2, S=8, D=32.
    B, S, D, V = 2, 8, 32, 64
    key = jax.random.PRNGKey(0)
    k_emb, k_tok, k_x = jax.random.split(key, 3)
    emb_table = jax.random.normal(k_emb, (V, D), dtype=jnp.float32)
    tok = jax.random.randint(k_tok, (B, S), 0, V, dtype=jnp.int32)
    pe = _build_pe(D, MAX_LEN)

    out = jax.block_until_ready(embed_positional_encoding_forward(tok, emb_table, pe))
    ref = jnp.take(emb_table, tok, axis=0) + pe[:S][None, :, :]
    assert out.shape == (B, S, D)
    assert jnp.allclose(out, ref, atol=1e-6, rtol=1e-6)

    # 2) Standalone PE add on a precomputed activation (same small shape).
    x = jax.random.normal(k_x, (B, S, D), dtype=jnp.float32)
    out_pe = jax.block_until_ready(positional_encoding_forward(x, pe))
    assert jnp.allclose(out_pe, x + pe[:S][None, :, :], atol=1e-6, rtol=1e-6)

    # 3) Larger fused case: ragged sequence chunks (S=40 with ts=16) + bf16 table.
    B2, S2, D2, V2 = 4, 40, 256, 1000
    pe2 = _build_pe(D2, MAX_LEN)
    emb2 = jax.random.normal(jax.random.PRNGKey(1), (V2, D2), dtype=jnp.bfloat16)
    tok2 = jax.random.randint(jax.random.PRNGKey(2), (B2, S2), 0, V2, dtype=jnp.int32)
    out2 = jax.block_until_ready(embed_positional_encoding_forward(tok2, emb2, pe2))
    ref2 = jnp.take(emb2, tok2, axis=0) + pe2[:S2][None, :, :].astype(jnp.bfloat16)
    assert jnp.allclose(
        out2.astype(jnp.float32), ref2.astype(jnp.float32), atol=2e-2, rtol=2e-2
    )

    # 4) Lane-dense multi-step PE-add path (both batch and sequence-plane tiling).
    x4 = jax.random.normal(jax.random.PRNGKey(3), (4, 128, 256), dtype=jnp.float32)
    pe4 = _build_pe(256, MAX_LEN)
    out4 = jax.block_until_ready(
        positional_encoding_forward(x4, pe4, target_block_bytes=64 * 1024)
    )
    assert jnp.allclose(out4, x4 + pe4[:128][None, :, :], atol=1e-6, rtol=1e-6)

    print("KERNEL_OK")
</pallas_src>

<mosaic_0001>
module attributes {stable_mosaic.version = 11 : i64} {
  func.func @kernel(%arg0: i32, %arg1: i32, %arg2: memref<2x8xi32, #tpu.memory_space<smem>>, %arg3: memref<64x32xf32, #tpu.memory_space<any>>, %arg4: memref<8x32xf32, #tpu.memory_space<vmem>>, %arg5: memref<1x8x32xf32, #tpu.memory_space<vmem>>, %arg6: memref<8x32xf32, #tpu.memory_space<vmem>>, %arg7: memref<8x!tpu.dma_semaphore, #tpu.memory_space<semaphore_mem>>) attributes {dimension_semantics = [#tpu.dimension_semantics<parallel>, #tpu.dimension_semantics<arbitrary>], iteration_bounds = array<i64: 2, 1>, scalar_prefetch = 1 : i64, scratch_operands = 2 : i64, tpu.core_type = #tpu.core_type<tc>, window_params = [{}, {transform_indices = @transform_1, window_bounds = array<i64: 8, 32>}, {transform_indices = @transform_2, window_bounds = array<i64: 1, 8, 32>}]} {
    %c8_i32 = arith.constant 8 : i32
    %0 = arith.muli %arg1, %c8_i32 : i32
    %c0_i32 = arith.constant 0 : i32
    %1 = arith.addi %0, %c0_i32 : i32
    %c7_i32 = arith.constant 7 : i32
    %2 = arith.minsi %1, %c7_i32 : i32
    %3 = arith.index_cast %arg0 : i32 to index
    %4 = arith.index_cast %2 : i32 to index
    %5 = memref.load %arg2[%3, %4] : memref<2x8xi32, #tpu.memory_space<smem>>
    %c0_i32_0 = arith.constant 0 : i32
    %c0_i32_1 = arith.constant 0 : i32
    %6 = tpu.memref_slice %arg3[%5, %c0_i32_1] : memref<64x32xf32, #tpu.memory_space<any>> -> memref<1x32xf32, #tpu.memory_space<any>>
    %c0_i32_2 = arith.constant 0 : i32
    %c0_i32_3 = arith.constant 0 : i32
    %7 = tpu.memref_slice %arg6[%c0_i32_2, %c0_i32_3] : memref<8x32xf32, #tpu.memory_space<vmem>> -> memref<1x32xf32, #tpu.memory_space<vmem>>
    %8 = tpu.memref_slice %arg7[%c0_i32_0] : memref<8x!tpu.dma_semaphore, #tpu.memory_space<semaphore_mem>> -> memref<1x!tpu.dma_semaphore, #tpu.memory_space<semaphore_mem>>
    %9 = tpu.memref_squeeze %8 : memref<1x!tpu.dma_semaphore, #tpu.memory_space<semaphore_mem>> -> memref<!tpu.dma_semaphore, #tpu.memory_space<semaphore_mem>>
    tpu.enqueue_dma source(%6 : memref<1x32xf32, #tpu.memory_space<any>>) target(%7 : memref<1x32xf32, #tpu.memory_space<vmem>>) target_semaphore(%9 : memref<!tpu.dma_semaphore, #tpu.memory_space<semaphore_mem>>)
    %c1_i32 = arith.constant 1 : i32
    %10 = arith.addi %0, %c1_i32 : i32
    %c7_i32_4 = arith.constant 7 : i32
    %11 = arith.minsi %10, %c7_i32_4 : i32
    %12 = arith.index_cast %arg0 : i32 to index
    %13 = arith.index_cast %11 : i32 to index
    %14 = memref.load %arg2[%12, %13] : memref<2x8xi32, #tpu.memory_space<smem>>
    %c1_i32_5 = arith.constant 1 : i32
    %c0_i32_6 = arith.constant 0 : i32
    %15 = tpu.memref_slice %arg3[%14, %c0_i32_6] : memref<64x32xf32, #tpu.memory_space<any>> -> memref<1x32xf32, #tpu.memory_space<any>>
    %c1_i32_7 = arith.constant 1 : i32
    %c0_i32_8 = arith.constant 0 : i32
    %16 = tpu.memref_slice %arg6[%c1_i32_7, %c0_i32_8] : memref<8x32xf32, #tpu.memory_space<vmem>> -> memref<1x32xf32, #tpu.memory_space<vmem>>
    %17 = tpu.memref_slice %arg7[%c1_i32_5] : memref<8x!tpu.dma_semaphore, #tpu.memory_space<semaphore_mem>> -> memref<1x!tpu.dma_semaphore, #tpu.memory_space<semaphore_mem>>
    %18 = tpu.memref_squeeze %17 : memref<1x!tpu.dma_semaphore, #tpu.memory_space<semaphore_mem>> -> memref<!tpu.dma_semaphore, #tpu.memory_space<semaphore_mem>>
    tpu.enqueue_dma source(%15 : memref<1x32xf32, #tpu.memory_space<any>>) target(%16 : memref<1x32xf32, #tpu.memory_space<vmem>>) target_semaphore(%18 : memref<!tpu.dma_semaphore, #tpu.memory_space<semaphore_mem>>)
    %c2_i32 = arith.constant 2 : i32
    %19 = arith.addi %0, %c2_i32 : i32
    %c7_i32_9 = arith.constant 7 : i32
    %20 = arith.minsi %19, %c7_i32_9 : i32
    %21 = arith.index_cast %arg0 : i32 to index
    %22 = arith.index_cast %20 : i32 to index
    %23 = memref.load %arg2[%21, %22] : memref<2x8xi32, #tpu.memory_space<smem>>
    %c2_i32_10 = arith.constant 2 : i32
    %c0_i32_11 = arith.constant 0 : i32
    %24 = tpu.memref_slice %arg3[%23, %c0_i32_11] : memref<64x32xf32, #tpu.memory_space<any>> -> memref<1x32xf32, #tpu.memory_space<any>>
    %c2_i32_12 = arith.constant 2 : i32
    %c0_i32_13 = arith.constant 0 : i32
    %25 = tpu.memref_slice %arg6[%c2_i32_12, %c0_i32_13] : memref<8x32xf32, #tpu.memory_space<vmem>> -> memref<1x32xf32, #tpu.memory_space<vmem>>
    %26 = tpu.memref_slice %arg7[%c2_i32_10] : memref<8x!tpu.dma_semaphore, #tpu.memory_space<semaphore_mem>> -> memref<1x!tpu.dma_semaphore, #tpu.memory_space<semaphore_mem>>
    %27 = tpu.memref_squeeze %26 : memref<1x!tpu.dma_semaphore, #tpu.memory_space<semaphore_mem>> -> memref<!tpu.dma_semaphore, #tpu.memory_space<semaphore_mem>>
    tpu.enqueue_dma source(%24 : memref<1x32xf32, #tpu.memory_space<any>>) target(%25 : memref<1x32xf32, #tpu.memory_space<vmem>>) target_semaphore(%27 : memref<!tpu.dma_semaphore, #tpu.memory_space<semaphore_mem>>)
    %c3_i32 = arith.constant 3 : i32
    %28 = arith.addi %0, %c3_i32 : i32
    %c7_i32_14 = arith.constant 7 : i32
    %29 = arith.minsi %28, %c7_i32_14 : i32
    %30 = arith.index_cast %arg0 : i32 to index
    %31 = arith.index_cast %29 : i32 to index
    %32 = memref.load %arg2[%30, %31] : memref<2x8xi32, #tpu.memory_space<smem>>
    %c3_i32_15 = arith.constant 3 : i32
    %c0_i32_16 = arith.constant 0 : i32
    %33 = tpu.memref_slice %arg3[%32, %c0_i32_16] : memref<64x32xf32, #tpu.memory_space<any>> -> memref<1x32xf32, #tpu.memory_space<any>>
    %c3_i32_17 = arith.constant 3 : i32
    %c0_i32_18 = arith.constant 0 : i32
    %34 = tpu.memref_slice %arg6[%c3_i32_17, %c0_i32_18] : memref<8x32xf32, #tpu.memory_space<vmem>> -> memref<1x32xf32, #tpu.memory_space<vmem>>
    %35 = tpu.memref_slice %arg7[%c3_i32_15] : memref<8x!tpu.dma_semaphore, #tpu.memory_space<semaphore_mem>> -> memref<1x!tpu.dma_semaphore, #tpu.memory_space<semaphore_mem>>
    %36 = tpu.memref_squeeze %35 : memref<1x!tpu.dma_semaphore, #tpu.memory_space<semaphore_mem>> -> memref<!tpu.dma_semaphore, #tpu.memory_space<semaphore_mem>>
    tpu.enqueue_dma source(%33 : memref<1x32xf32, #tpu.memory_space<any>>) target(%34 : memref<1x32xf32, #tpu.memory_space<vmem>>) target_semaphore(%36 : memref<!tpu.dma_semaphore, #tpu.memory_space<semaphore_mem>>)
    %c4_i32 = arith.constant 4 : i32
    %37 = arith.addi %0, %c4_i32 : i32
    %c7_i32_19 = arith.constant 7 : i32
    %38 = arith.minsi %37, %c7_i32_19 : i32
    %39 = arith.index_cast %arg0 : i32 to index
    %40 = arith.index_cast %38 : i32 to index
    %41 = memref.load %arg2[%39, %40] : memref<2x8xi32, #tpu.memory_space<smem>>
    %c4_i32_20 = arith.constant 4 : i32
    %c0_i32_21 = arith.constant 0 : i32
    %42 = tpu.memref_slice %arg3[%41, %c0_i32_21] : memref<64x32xf32, #tpu.memory_space<any>> -> memref<1x32xf32, #tpu.memory_space<any>>
    %c4_i32_22 = arith.constant 4 : i32
    %c0_i32_23 = arith.constant 0 : i32
    %43 = tpu.memref_slice %arg6[%c4_i32_22, %c0_i32_23] : memref<8x32xf32, #tpu.memory_space<vmem>> -> memref<1x32xf32, #tpu.memory_space<vmem>>
    %44 = tpu.memref_slice %arg7[%c4_i32_20] : memref<8x!tpu.dma_semaphore, #tpu.memory_space<semaphore_mem>> -> memref<1x!tpu.dma_semaphore, #tpu.memory_space<semaphore_mem>>
    %45 = tpu.memref_squeeze %44 : memref<1x!tpu.dma_semaphore, #tpu.memory_space<semaphore_mem>> -> memref<!tpu.dma_semaphore, #tpu.memory_space<semaphore_mem>>
    tpu.enqueue_dma source(%42 : memref<1x32xf32, #tpu.memory_space<any>>) target(%43 : memref<1x32xf32, #tpu.memory_space<vmem>>) target_semaphore(%45 : memref<!tpu.dma_semaphore, #tpu.memory_space<semaphore_mem>>)
    %c5_i32 = arith.constant 5 : i32
    %46 = arith.addi %0, %c5_i32 : i32
    %c7_i32_24 = arith.constant 7 : i32
    %47 = arith.minsi %46, %c7_i32_24 : i32
    %48 = arith.index_cast %arg0 : i32 to index
    %49 = arith.index_cast %47 : i32 to index
    %50 = memref.load %arg2[%48, %49] : memref<2x8xi32, #tpu.memory_space<smem>>
    %c5_i32_25 = arith.constant 5 : i32
    %c0_i32_26 = arith.constant 0 : i32
    %51 = tpu.memref_slice %arg3[%50, %c0_i32_26] : memref<64x32xf32, #tpu.memory_space<any>> -> memref<1x32xf32, #tpu.memory_space<any>>
    %c5_i32_27 = arith.constant 5 : i32
    %c0_i32_28 = arith.constant 0 : i32
    %52 = tpu.memref_slice %arg6[%c5_i32_27, %c0_i32_28] : memref<8x32xf32, #tpu.memory_space<vmem>> -> memref<1x32xf32, #tpu.memory_space<vmem>>
    %53 = tpu.memref_slice %arg7[%c5_i32_25] : memref<8x!tpu.dma_semaphore, #tpu.memory_space<semaphore_mem>> -> memref<1x!tpu.dma_semaphore, #tpu.memory_space<semaphore_mem>>
    %54 = tpu.memref_squeeze %53 : memref<1x!tpu.dma_semaphore, #tpu.memory_space<semaphore_mem>> -> memref<!tpu.dma_semaphore, #tpu.memory_space<semaphore_mem>>
    tpu.enqueue_dma source(%51 : memref<1x32xf32, #tpu.memory_space<any>>) target(%52 : memref<1x32xf32, #tpu.memory_space<vmem>>) target_semaphore(%54 : memref<!tpu.dma_semaphore, #tpu.memory_space<semaphore_mem>>)
    %c6_i32 = arith.constant 6 : i32
    %55 = arith.addi %0, %c6_i32 : i32
    %c7_i32_29 = arith.constant 7 : i32
    %56 = arith.minsi %55, %c7_i32_29 : i32
    %57 = arith.index_cast %arg0 : i32 to index
    %58 = arith.index_cast %56 : i32 to index
    %59 = memref.load %arg2[%57, %58] : memref<2x8xi32, #tpu.memory_space<smem>>
    %c6_i32_30 = arith.constant 6 : i32
    %c0_i32_31 = arith.constant 0 : i32
    %60 = tpu.memref_slice %arg3[%59, %c0_i32_31] : memref<64x32xf32, #tpu.memory_space<any>> -> memref<1x32xf32, #tpu.memory_space<any>>
    %c6_i32_32 = arith.constant 6 : i32
    %c0_i32_33 = arith.constant 0 : i32
    %61 = tpu.memref_slice %arg6[%c6_i32_32, %c0_i32_33] : memref<8x32xf32, #tpu.memory_space<vmem>> -> memref<1x32xf32, #tpu.memory_space<vmem>>
    %62 = tpu.memref_slice %arg7[%c6_i32_30] : memref<8x!tpu.dma_semaphore, #tpu.memory_space<semaphore_mem>> -> memref<1x!tpu.dma_semaphore, #tpu.memory_space<semaphore_mem>>
    %63 = tpu.memref_squeeze %62 : memref<1x!tpu.dma_semaphore, #tpu.memory_space<semaphore_mem>> -> memref<!tpu.dma_semaphore, #tpu.memory_space<semaphore_mem>>
    tpu.enqueue_dma source(%60 : memref<1x32xf32, #tpu.memory_space<any>>) target(%61 : memref<1x32xf32, #tpu.memory_space<vmem>>) target_semaphore(%63 : memref<!tpu.dma_semaphore, #tpu.memory_space<semaphore_mem>>)
    %c7_i32_34 = arith.constant 7 : i32
    %64 = arith.addi %0, %c7_i32_34 : i32
    %c7_i32_35 = arith.constant 7 : i32
    %65 = arith.minsi %64, %c7_i32_35 : i32
    %66 = arith.index_cast %arg0 : i32 to index
    %67 = arith.index_cast %65 : i32 to index
    %68 = memref.load %arg2[%66, %67] : memref<2x8xi32, #tpu.memory_space<smem>>
    %c7_i32_36 = arith.constant 7 : i32
    %c0_i32_37 = arith.constant 0 : i32
    %69 = tpu.memref_slice %arg3[%68, %c0_i32_37] : memref<64x32xf32, #tpu.memory_space<any>> -> memref<1x32xf32, #tpu.memory_space<any>>
    %c7_i32_38 = arith.constant 7 : i32
    %c0_i32_39 = arith.constant 0 : i32
    %70 = tpu.memref_slice %arg6[%c7_i32_38, %c0_i32_39] : memref<8x32xf32, #tpu.memory_space<vmem>> -> memref<1x32xf32, #tpu.memory_space<vmem>>
    %71 = tpu.memref_slice %arg7[%c7_i32_36] : memref<8x!tpu.dma_semaphore, #tpu.memory_space<semaphore_mem>> -> memref<1x!tpu.dma_semaphore, #tpu.memory_space<semaphore_mem>>
    %72 = tpu.memref_squeeze %71 : memref<1x!tpu.dma_semaphore, #tpu.memory_space<semaphore_mem>> -> memref<!tpu.dma_semaphore, #tpu.memory_space<semaphore_mem>>
    tpu.enqueue_dma source(%69 : memref<1x32xf32, #tpu.memory_space<any>>) target(%70 : memref<1x32xf32, #tpu.memory_space<vmem>>) target_semaphore(%72 : memref<!tpu.dma_semaphore, #tpu.memory_space<semaphore_mem>>)
    %c0_i32_40 = arith.constant 0 : i32
    %c0_i32_41 = arith.constant 0 : i32
    %73 = tpu.memref_slice %arg3[%5, %c0_i32_41] : memref<64x32xf32, #tpu.memory_space<any>> -> memref<1x32xf32, #tpu.memory_space<any>>
    %c0_i32_42 = arith.constant 0 : i32
    %c0_i32_43 = arith.constant 0 : i32
    %74 = tpu.memref_slice %arg6[%c0_i32_42, %c0_i32_43] : memref<8x32xf32, #tpu.memory_space<vmem>> -> memref<1x32xf32, #tpu.memory_space<vmem>>
    %75 = tpu.memref_slice %arg7[%c0_i32_40] : memref<8x!tpu.dma_semaphore, #tpu.memory_space<semaphore_mem>> -> memref<1x!tpu.dma_semaphore, #tpu.memory_space<semaphore_mem>>
    %76 = tpu.memref_squeeze %75 : memref<1x!tpu.dma_semaphore, #tpu.memory_space<semaphore_mem>> -> memref<!tpu.dma_semaphore, #tpu.memory_space<semaphore_mem>>
    tpu.wait_dma2 semaphore(%76 : memref<!tpu.dma_semaphore, #tpu.memory_space<semaphore_mem>>) src(%73 : memref<1x32xf32, #tpu.memory_space<any>>) dst(%74 : memref<1x32xf32, #tpu.memory_space<vmem>>)
    %c1_i32_44 = arith.constant 1 : i32
    %c0_i32_45 = arith.constant 0 : i32
    %77 = tpu.memref_slice %arg3[%14, %c0_i32_45] : memref<64x32xf32, #tpu.memory_space<any>> -> memref<1x32xf32, #tpu.memory_space<any>>
    %c1_i32_46 = arith.constant 1 : i32
    %c0_i32_47 = arith.constant 0 : i32
    %78 = tpu.memref_slice %arg6[%c1_i32_46, %c0_i32_47] : memref<8x32xf32, #tpu.memory_space<vmem>> -> memref<1x32xf32, #tpu.memory_space<vmem>>
    %79 = tpu.memref_slice %arg7[%c1_i32_44] : memref<8x!tpu.dma_semaphore, #tpu.memory_space<semaphore_mem>> -> memref<1x!tpu.dma_semaphore, #tpu.memory_space<semaphore_mem>>
    %80 = tpu.memref_squeeze %79 : memref<1x!tpu.dma_semaphore, #tpu.memory_space<semaphore_mem>> -> memref<!tpu.dma_semaphore, #tpu.memory_space<semaphore_mem>>
    tpu.wait_dma2 semaphore(%80 : memref<!tpu.dma_semaphore, #tpu.memory_space<semaphore_mem>>) src(%77 : memref<1x32xf32, #tpu.memory_space<any>>) dst(%78 : memref<1x32xf32, #tpu.memory_space<vmem>>)
    %c2_i32_48 = arith.constant 2 : i32
    %c0_i32_49 = arith.constant 0 : i32
    %81 = tpu.memref_slice %arg3[%23, %c0_i32_49] : memref<64x32xf32, #tpu.memory_space<any>> -> memref<1x32xf32, #tpu.memory_space<any>>
    %c2_i32_50 = arith.constant 2 : i32
    %c0_i32_51 = arith.constant 0 : i32
    %82 = tpu.memref_slice %arg6[%c2_i32_50, %c0_i32_51] : memref<8x32xf32, #tpu.memory_space<vmem>> -> memref<1x32xf32, #tpu.memory_space<vmem>>
    %83 = tpu.memref_slice %arg7[%c2_i32_48] : memref<8x!tpu.dma_semaphore, #tpu.memory_space<semaphore_mem>> -> memref<1x!tpu.dma_semaphore, #tpu.memory_space<semaphore_mem>>
    %84 = tpu.memref_squeeze %83 : memref<1x!tpu.dma_semaphore, #tpu.memory_space<semaphore_mem>> -> memref<!tpu.dma_semaphore, #tpu.memory_space<semaphore_mem>>
    tpu.wait_dma2 semaphore(%84 : memref<!tpu.dma_semaphore, #tpu.memory_space<semaphore_mem>>) src(%81 : memref<1x32xf32, #tpu.memory_space<any>>) dst(%82 : memref<1x32xf32, #tpu.memory_space<vmem>>)
    %c3_i32_52 = arith.constant 3 : i32
    %c0_i32_53 = arith.constant 0 : i32
    %85 = tpu.memref_slice %arg3[%32, %c0_i32_53] : memref<64x32xf32, #tpu.memory_space<any>> -> memref<1x32xf32, #tpu.memory_space<any>>
    %c3_i32_54 = arith.constant 3 : i32
    %c0_i32_55 = arith.constant 0 : i32
    %86 = tpu.memref_slice %arg6[%c3_i32_54, %c0_i32_55] : memref<8x32xf32, #tpu.memory_space<vmem>> -> memref<1x32xf32, #tpu.memory_space<vmem>>
    %87 = tpu.memref_slice %arg7[%c3_i32_52] : memref<8x!tpu.dma_semaphore, #tpu.memory_space<semaphore_mem>> -> memref<1x!tpu.dma_semaphore, #tpu.memory_space<semaphore_mem>>
    %88 = tpu.memref_squeeze %87 : memref<1x!tpu.dma_semaphore, #tpu.memory_space<semaphore_mem>> -> memref<!tpu.dma_semaphore, #tpu.memory_space<semaphore_mem>>
    tpu.wait_dma2 semaphore(%88 : memref<!tpu.dma_semaphore, #tpu.memory_space<semaphore_mem>>) src(%85 : memref<1x32xf32, #tpu.memory_space<any>>) dst(%86 : memref<1x32xf32, #tpu.memory_space<vmem>>)
    %c4_i32_56 = arith.constant 4 : i32
    %c0_i32_57 = arith.constant 0 : i32
    %89 = tpu.memref_slice %arg3[%41, %c0_i32_57] : memref<64x32xf32, #tpu.memory_space<any>> -> memref<1x32xf32, #tpu.memory_space<any>>
    %c4_i32_58 = arith.constant 4 : i32
    %c0_i32_59 = arith.constant 0 : i32
    %90 = tpu.memref_slice %arg6[%c4_i32_58, %c0_i32_59] : memref<8x32xf32, #tpu.memory_space<vmem>> -> memref<1x32xf32, #tpu.memory_space<vmem>>
    %91 = tpu.memref_slice %arg7[%c4_i32_56] : memref<8x!tpu.dma_semaphore, #tpu.memory_space<semaphore_mem>> -> memref<1x!tpu.dma_semaphore, #tpu.memory_space<semaphore_mem>>
    %92 = tpu.memref_squeeze %91 : memref<1x!tpu.dma_semaphore, #tpu.memory_space<semaphore_mem>> -> memref<!tpu.dma_semaphore, #tpu.memory_space<semaphore_mem>>
    tpu.wait_dma2 semaphore(%92 : memref<!tpu.dma_semaphore, #tpu.memory_space<semaphore_mem>>) src(%89 : memref<1x32xf32, #tpu.memory_space<any>>) dst(%90 : memref<1x32xf32, #tpu.memory_space<vmem>>)
    %c5_i32_60 = arith.constant 5 : i32
    %c0_i32_61 = arith.constant 0 : i32
    %93 = tpu.memref_slice %arg3[%50, %c0_i32_61] : memref<64x32xf32, #tpu.memory_space<any>> -> memref<1x32xf32, #tpu.memory_space<any>>
    %c5_i32_62 = arith.constant 5 : i32
    %c0_i32_63 = arith.constant 0 : i32
    %94 = tpu.memref_slice %arg6[%c5_i32_62, %c0_i32_63] : memref<8x32xf32, #tpu.memory_space<vmem>> -> memref<1x32xf32, #tpu.memory_space<vmem>>
    %95 = tpu.memref_slice %arg7[%c5_i32_60] : memref<8x!tpu.dma_semaphore, #tpu.memory_space<semaphore_mem>> -> memref<1x!tpu.dma_semaphore, #tpu.memory_space<semaphore_mem>>
    %96 = tpu.memref_squeeze %95 : memref<1x!tpu.dma_semaphore, #tpu.memory_space<semaphore_mem>> -> memref<!tpu.dma_semaphore, #tpu.memory_space<semaphore_mem>>
    tpu.wait_dma2 semaphore(%96 : memref<!tpu.dma_semaphore, #tpu.memory_space<semaphore_mem>>) src(%93 : memref<1x32xf32, #tpu.memory_space<any>>) dst(%94 : memref<1x32xf32, #tpu.memory_space<vmem>>)
    %c6_i32_64 = arith.constant 6 : i32
    %c0_i32_65 = arith.constant 0 : i32
    %97 = tpu.memref_slice %arg3[%59, %c0_i32_65] : memref<64x32xf32, #tpu.memory_space<any>> -> memref<1x32xf32, #tpu.memory_space<any>>
    %c6_i32_66 = arith.constant 6 : i32
    %c0_i32_67 = arith.constant 0 : i32
    %98 = tpu.memref_slice %arg6[%c6_i32_66, %c0_i32_67] : memref<8x32xf32, #tpu.memory_space<vmem>> -> memref<1x32xf32, #tpu.memory_space<vmem>>
    %99 = tpu.memref_slice %arg7[%c6_i32_64] : memref<8x!tpu.dma_semaphore, #tpu.memory_space<semaphore_mem>> -> memref<1x!tpu.dma_semaphore, #tpu.memory_space<semaphore_mem>>
    %100 = tpu.memref_squeeze %99 : memref<1x!tpu.dma_semaphore, #tpu.memory_space<semaphore_mem>> -> memref<!tpu.dma_semaphore, #tpu.memory_space<semaphore_mem>>
    tpu.wait_dma2 semaphore(%100 : memref<!tpu.dma_semaphore, #tpu.memory_space<semaphore_mem>>) src(%97 : memref<1x32xf32, #tpu.memory_space<any>>) dst(%98 : memref<1x32xf32, #tpu.memory_space<vmem>>)
    %c7_i32_68 = arith.constant 7 : i32
    %c0_i32_69 = arith.constant 0 : i32
    %101 = tpu.memref_slice %arg3[%68, %c0_i32_69] : memref<64x32xf32, #tpu.memory_space<any>> -> memref<1x32xf32, #tpu.memory_space<any>>
    %c7_i32_70 = arith.constant 7 : i32
    %c0_i32_71 = arith.constant 0 : i32
    %102 = tpu.memref_slice %arg6[%c7_i32_70, %c0_i32_71] : memref<8x32xf32, #tpu.memory_space<vmem>> -> memref<1x32xf32, #tpu.memory_space<vmem>>
    %103 = tpu.memref_slice %arg7[%c7_i32_68] : memref<8x!tpu.dma_semaphore, #tpu.memory_space<semaphore_mem>> -> memref<1x!tpu.dma_semaphore, #tpu.memory_space<semaphore_mem>>
    %104 = tpu.memref_squeeze %103 : memref<1x!tpu.dma_semaphore, #tpu.memory_space<semaphore_mem>> -> memref<!tpu.dma_semaphore, #tpu.memory_space<semaphore_mem>>
    tpu.wait_dma2 semaphore(%104 : memref<!tpu.dma_semaphore, #tpu.memory_space<semaphore_mem>>) src(%101 : memref<1x32xf32, #tpu.memory_space<any>>) dst(%102 : memref<1x32xf32, #tpu.memory_space<vmem>>)
    %c0 = arith.constant 0 : index
    %c0_72 = arith.constant 0 : index
    %105 = vector.load %arg6[%c0, %c0_72] : memref<8x32xf32, #tpu.memory_space<vmem>>, vector<8x32xf32>
    %c0_73 = arith.constant 0 : index
    %c0_74 = arith.constant 0 : index
    %106 = vector.load %arg4[%c0_73, %c0_74] : memref<8x32xf32, #tpu.memory_space<vmem>>, vector<8x32xf32>
    %107 = arith.addf %105, %106 : vector<8x32xf32>
    %c0_75 = arith.constant 0 : index
    %c0_76 = arith.constant 0 : index
    %c0_77 = arith.constant 0 : index
    %108 = vector.load %arg5[%c0_75, %c0_76, %c0_77] : memref<1x8x32xf32, #tpu.memory_space<vmem>>, vector<1x8x32xf32>
    %109 = vector.shape_cast %108 : vector<1x8x32xf32> to vector<8x32xf32>
    %110 = vector.shape_cast %107 : vector<8x32xf32> to vector<1x8x32xf32>
    tpu.vector_store %arg5[%c0_75, %c0_76, %c0_77], %110 {strides = array<i32>} : memref<1x8x32xf32, #tpu.memory_space<vmem>>, vector<1x8x32xf32>,
    return
  }
  func.func @transform_1(%arg0: i32, %arg1: i32, %arg2: memref<2x8xi32, #tpu.memory_space<smem>>) -> (i32, i32) {
    %c0_i32 = arith.constant 0 : i32
    %c0_i32_0 = arith.constant 0 : i32
    return %arg1, %c0_i32 : i32, i32
  }
  func.func @transform_2(%arg0: i32, %arg1: i32, %arg2: memref<2x8xi32, #tpu.memory_space<smem>>) -> (i32, i32, i32) {
    %c0_i32 = arith.constant 0 : i32
    %c0_i32_0 = arith.constant 0 : i32
    return %arg0, %arg1, %c0_i32 : i32, i32, i32
  }
}

</mosaic_0001>

<bundles_post_ra>
// kernel: tpu_custom_call.1
= control target key start
LH: loop header
LB: loop body
LE: loop exit
PB: predicated region body
PF: predicated region fallthrough
CT: control target
= control target key end

     0   :  { %s1224_s0 = inlined_call_operand.vmem [shape: s32[2,8], index: 0, kind: input, shape index: {}]   ;;  %s1225_s1 = inlined_call_operand.vmem [shape: f32[64,32], index: 1, kind: input, shape index: {}]   ;;  %s1226_s2 = inlined_call_operand.vmem [shape: f32[8,32], index: 2, kind: input, shape index: {}]   ;;  %s1227_s3 = inlined_call_operand.hbm [shape: f32[2,8,32], index: 3, kind: output, shape index: {}]  }
   0x1   :  { %s8_s14 = sshll.u32 %s1224_s0, 4  ;;  %s9_s14 = int_to_ptr.vmem [resolvable:$true] %s8_s14 }
   0x2   :  { %s936_s15 = scalar_lea.vmem %s9_s14, 32  ;;  %p941_p1 = scmp.lt.s32.totalorder %s9_s14, %s9_s14 }
   0x3   :  { %p937_p0 = scmp.ne.s32.totalorder %s9_s14, %s936_s15  ;;  %p942_p2 = scmp.lt.s32.totalorder %s936_s15, %s936_s15 }
   0x5   :  { %p943_p3 = por %p942_p2, %p941_p1 }
   0x7   :  { %p944_p4 = pnand %p943_p3, %p937_p0 }
   0x9   :  { %947 = shalt.err (!%p944_p4)  }
   0xa   :  { %s1046_s16 = smov [#allocation5]  }
   0xb   :  { %11 = dma.vmem_to_smem %s9_s14, 32, %s1046_s16, [#allocation4] }
   0xc   :  { %1000 = dma.done.wait [#allocation4], 32 }
   0xd   :  { %1001 = vsyncadd [#allocation4], 4294967264 }
   0xe   :  { %13 = sfence }
   0xf   :  { %14 = vsyncpa [#allocation7], 0 }
  0x10   :  { %16 = vsyncpa [#allocation7 + $0x1], 0  ;;  %s1071_s17 = smov 0   ;;  %s1073_s18 = smov 0  }
  0x11   :  { %s1075_s0 = smov 0   ;;  %s1077_s19 = smov 0  }
  0x12   :  { %s1079_s20 = smov 0   ;;  %s1081_s21 = smov 0  }
  0x13 LB: > { %s854_s22 = sadd.s32 4294967295, %s1044_s21   ;;  %s855_s23 = sadd.s32 4294967294, %s1044_s21   ;;  %s1044_s21 = sphi %s1081_s21, %s22_s21   ;;  %s1040_s20 = sphi %s1079_s20, %s1234_s20   ;;  %s1036_s19 = sphi %s1077_s19, %s1233_s19   ;;  %s1032_s0 = sphi %s1075_s0, %s1232_s0   ;;  %s1028_s18 = sphi %s1073_s18, %s1231_s18   ;;  %s1024_s17 = sphi %s1071_s17, %s1230_s17  }
  0x14   : > { %s34_s24 = sadd.s32 1, %s1040_s20  ;;  %s69_s25 = sadd.s32 1, %s1032_s0 }
  0x15   : > { %p36_p5 = scmp.ge.s32.totalorder %s34_s24, 2  ;;  %p79_p6 = scmp.ne.s32.totalorder %s1032_s0, %s1028_s18 }
  0x16   : > { %p80_p7 = scmp.eq.s32.totalorder %s854_s22, 1  ;;  %p85_p8 = scmp.ne.s32.totalorder %s1028_s18, %s1024_s17 }
  0x17   : > { %s1236_s24 = smov (%p36_p5, %s34_s24), 0  ;;  %p86_p10 = scmp.eq.s32.totalorder %s855_s23, 1 }
  0x18   : > { %p1109_p9 = por %p80_p7, %p79_p6  ;;  %s64_s27 = ssub.s32 %s1040_s20, %s1236_s24 }
  0x19   : > { %p858_p11 = scmp.ge.s32.totalorder %s1044_s21, 1  ;;  %p67_p12 = scmp.eq.s32.totalorder %s64_s27, 0 }
  0x1a   : > { %p1116_p13 = por %p86_p10, %p85_p8  ;;  %p111_p0 = scmp.lt.s32.totalorder %s1044_s21, 3 }
  0x1b   : > { %s1122_s29 = scalar_select %p67_p12, %s1032_s0, %s69_s25  }
  0x1c   : > { %p112_p1 = pnand %p858_p11, %p111_p0 }
  0x1d   : > { %s127_s30 = sand.u32 (!%p112_p1), 1, %s1028_s18   ;;  %s1125_s4 = sshll.u32 (!%p112_p1), %s1036_s19, 7 }
  0x1e   : > { %115 = sbr.rel (%p112_p1) target bundleno = 150 (0x96), region = 24  ;;  %s1129_s5 = sshll.u32 (!%p112_p1), %s127_s30, 3 }
  0x1f   : > { %s144_s6 = sld [smem:[#allocation5 + %s1125_s4]] (!%p112_p1)  ;;  %s129_s10 = scalar_lea.vmem (!%p112_p1), [#allocation6], %s1129_s5 }
  0x25   : > { %s145_s9 = scalar_lea.vmem %s1225_s1, %s144_s6 }
  0x26   : > { %v163_v0 = vld [vmem:[%s145_s9] sm:$0x1] }
  0x27   : > { %164 = vst [vmem:[#allocation2] sm:$0x1] %v163_v0 }
  0x28   : > { %189 = vsyncadd [#allocation3], 16  ;;  %s199_s11 = sadd.s32 1, %s1125_s4 }
  0x29   : > { %s200_s12 = sld [smem:[#allocation5 + %s199_s11]] }
  0x2f   : > { %s201_s15 = scalar_lea.vmem %s1225_s1, %s200_s12 }
  0x30   : > { %v221_v1 = vld [vmem:[%s201_s15] sm:$0x1] }
  0x31   : > { %222 = vst [vmem:[#allocation2 + $0x1] sm:$0x1] %v221_v1 }
  0x32   : > { %247 = vsyncadd [#allocation3 + $0x1], 16  ;;  %s257_s16 = sadd.s32 2, %s1125_s4 }
  0x33   : > { %s258_s19 = sld [smem:[#allocation5 + %s257_s16]] }
  0x39   : > { %s259_s25 = scalar_lea.vmem %s1225_s1, %s258_s19 }
  0x3a   : > { %v279_v2 = vld [vmem:[%s259_s25] sm:$0x1] }
  0x3b   : > { %280 = vst [vmem:[#allocation2 + $0x2] sm:$0x1] %v279_v2 }
  0x3c   : > { %305 = vsyncadd [#allocation3 + $0x2], 16  ;;  %s315_s27 = sadd.s32 3, %s1125_s4 }
  0x3d   : > { %s316_s6 = sld [smem:[#allocation5 + %s315_s27]] }
  0x43   : > { %s317_s9 = scalar_lea.vmem %s1225_s1, %s316_s6 }
  0x44   : > { %v337_v3 = vld [vmem:[%s317_s9] sm:$0x1] }
  0x45   : > { %338 = vst [vmem:[#allocation2 + $0x3] sm:$0x1] %v337_v3 }
  0x46   : > { %363 = vsyncadd [#allocation3 + $0x3], 16  ;;  %s373_s11 = sadd.s32 4, %s1125_s4 }
  0x47   : > { %s374_s12 = sld [smem:[#allocation5 + %s373_s11]] }
  0x4d   : > { %s375_s15 = scalar_lea.vmem %s1225_s1, %s374_s12 }
  0x4e   : > { %v395_v4 = vld [vmem:[%s375_s15] sm:$0x1] }
  0x4f   : > { %396 = vst [vmem:[#allocation2 + $0x4] sm:$0x1] %v395_v4 }
  0x50   : > { %421 = vsyncadd [#allocation3 + $0x4], 16  ;;  %s431_s16 = sadd.s32 5, %s1125_s4 }
  0x51   : > { %s432_s19 = sld [smem:[#allocation5 + %s431_s16]] }
  0x57   : > { %s433_s25 = scalar_lea.vmem %s1225_s1, %s432_s19 }
  0x58   : > { %v453_v5 = vld [vmem:[%s433_s25] sm:$0x1] }
  0x59   : > { %454 = vst [vmem:[#allocation2 + $0x5] sm:$0x1] %v453_v5 }
  0x5a   : > { %479 = vsyncadd [#allocation3 + $0x5], 16  ;;  %s489_s27 = sadd.s32 6, %s1125_s4 }
  0x5b   : > { %s490_s6 = sld [smem:[#allocation5 + %s489_s27]] }
  0x61   : > { %s491_s9 = scalar_lea.vmem %s1225_s1, %s490_s6 }
  0x62   : > { %v511_v6 = vld [vmem:[%s491_s9] sm:$0x1] }
  0x63   : > { %512 = vst [vmem:[#allocation2 + $0x6] sm:$0x1] %v511_v6 }
  0x64   : > { %537 = vsyncadd [#allocation3 + $0x6], 16  ;;  %s547_s11 = sadd.s32 7, %s1125_s4 }
  0x65   : > { %s548_s12 = sld [smem:[#allocation5 + %s547_s11]] }
  0x6b   : > { %s549_s15 = scalar_lea.vmem %s1225_s1, %s548_s12 }
  0x6c   : > { %v569_v7 = vld [vmem:[%s549_s15] sm:$0x1] }
  0x6d   : > { %570 = vst [vmem:[#allocation2 + $0x7] sm:$0x1] %v569_v7 }
  0x6e   : > { %595 = vsyncadd [#allocation3 + $0x7], 16 }
  0x6f   : > { %1002 = dma.done.wait [#allocation3], 16 }
  0x70   : > { %1003 = vsyncadd [#allocation3], 4294967280 }
  0x71   : > { %1004 = dma.done.wait [#allocation3 + $0x1], 16 }
  0x72   : > { %1005 = vsyncadd [#allocation3 + $0x1], 4294967280 }
  0x73   : > { %1006 = dma.done.wait [#allocation3 + $0x2], 16 }
  0x74   : > { %1007 = vsyncadd [#allocation3 + $0x2], 4294967280 }
  0x75   : > { %1008 = dma.done.wait [#allocation3 + $0x3], 16 }
  0x76   : > { %1009 = vsyncadd [#allocation3 + $0x3], 4294967280 }
  0x77   : > { %1010 = dma.done.wait [#allocation3 + $0x4], 16 }
  0x78   : > { %1011 = vsyncadd [#allocation3 + $0x4], 4294967280 }
  0x79   : > { %1012 = dma.done.wait [#allocation3 + $0x5], 16 }
  0x7a   : > { %1013 = vsyncadd [#allocation3 + $0x5], 4294967280 }
  0x7b   : > { %1014 = dma.done.wait [#allocation3 + $0x6], 16 }
  0x7c   : > { %1015 = vsyncadd [#allocation3 + $0x6], 4294967280 }
  0x7d   : > { %1016 = dma.done.wait [#allocation3 + $0x7], 16 }
  0x7e   : > { %1017 = vsyncadd [#allocation3 + $0x7], 4294967280  ;;  %s633_s16 = sshll.u32 %s129_s10, 4  ;;  %v613_v8 = vld [vmem:[#allocation2] sm:$0xff]  ;;  %vm616_vm0 = vcmask 261120   ;;  %s1173_s27 = scalar_lea.hbm %s1227_s3, %s1125_s4  ;;  %s1175_s16 = int_to_ptr.vmem [resolvable:$true] %s633_s16 }
  0x7f   : > { %v614_v9 = vld [vmem:[%s1226_s2] sm:$0xff]  ;;  %s619_s6 = scalar_lea.sflag [#allocation7], %s127_s30  ;;  %s948_s7 = scalar_lea.vmem %s1175_s16, 128 }
  0x80   : > { %v615_v10 = vadd.f32 %v614_v9, %v613_v8  ;;  %p949_p2 = scmp.ne.s32.totalorder %s1175_s16, %s948_s7  ;;  %s1047_s8 = smov [#allocation6]  }
  0x81   : > { %s952_s9 = sshll.u32 %s1047_s8, 4  ;;  %s953_s9 = int_to_ptr.vmem [resolvable:$false] %s952_s9 }
  0x82   : > { %617 = vst.msk [vmem:[%s129_s10] sm:$0xff] %vm616_vm0, %v615_v10  ;;  %p950_p3 = pnand %p949_p2, %p1109_p9  ;;  %s954_s11 = scalar_lea.vmem %s953_s9, 256 }
  0x83   : > { %p955_p5 = scmp.lt.s32.totalorder %s1175_s16, %s953_s9  ;;  %p956_p6 = scmp.lt.s32.totalorder %s954_s11, %s948_s7 }
  0x84   : > { %p951_p4 = pneg %p950_p3 }
  0x85   : > { %p957_p7 = por %p956_p6, %p955_p5 }
  0x87   : > { %p958_p8 = pnand %p957_p7, %p951_p4 }
  0x89   : > { %961 = shalt.err (!%p958_p8)
}
  0x8a   : > { %s962_s30 = scalar_lea.hbm %s1173_s27, 128  ;;  %s966_s10 = scalar_lea.hbm %s1227_s3, 256 }
  0x8b   : > { %p963_p10 = scmp.ne.s32.totalorder %s1173_s27, %s962_s30  ;;  %p967_p0 = scmp.lt.u32.totalorder %s1173_s27, %s1227_s3 }
  0x8c   : > { %p968_p1 = scmp.lt.u32.totalorder %s966_s10, %s962_s30  ;;  %p970_p3 = scmp.lt.u32.totalorder %s962_s30, %s1173_s27 }
  0x8d   : > { %p964_p11 = pnand %p963_p10, %p1109_p9 }
  0x8e   : > { %p969_p2 = por %p968_p1, %p967_p0 }
  0x8f   : > { %p965_p12 = pneg %p964_p11 }
  0x90   : > { %p971_p4 = por %p970_p3, %p969_p2 }
  0x92   : > { %p972_p5 = pnand %p971_p4, %p965_p12 }
  0x94   : > { %975 = shalt.err (!%p972_p5)
}
  0x95   : > { %880 = dma.vmem_to_hbm [thread:$0]  (%p1109_p9), %s1175_s16, 128, %s1173_s27, %s619_s6  }
  0x96 PF: > { %p886_p6 = scmp.ge.s32.totalorder %s1044_s21, 2  ;;  %s645_s14 = sand.u32 1, %s1024_s17  }
  0x97   : > { %s646_s15 = scalar_lea.sflag [#allocation7], %s645_s14 }
  0x98   : > { %p883_p7 = pnand %p886_p6, %p1116_p13 }
  0x9a   : > { %1019 = dma.done.wait (!%p883_p7), %s646_s15, 128  }
  0x9b   : > { %1021 = vsyncadd (!%p883_p7), %s646_s15, 4294967168  ;;  %s22_s21 = sadd.s32 1, %s1044_s21   ;;  %s1230_s17 = smov %s1028_s18 }
  0x9c   : > { %p19_p8 = scmp.ge.s32.totalorder %s22_s21, 4   ;;  %s1231_s18 = smov %s1032_s0 }
  0x9d   : > { %s1232_s0 = smov %s1122_s29  ;;  %s1233_s19 = smov %s1040_s20 }
  0x9e   : > { %s1234_s20 = smov %s1236_s24  ;;  %21 = sbr.rel (!%p19_p8) target bundleno = 19 (0x13), region = 408 }
  0xa5   :  { %651 = vsyncpa [#allocation7], 1 }
  0xa6   :  { %653 = vsyncpa [#allocation7 + $0x1], 1 }
  0xa7   :  { %654 = vsyncmov [#allocation3] }
  0xaa   :  { %s655_s26 = vpop.sfrf %654 }
  0xab   :  { %p872_p9 = scmp.ne.s32.totalorder %s655_s26, 0 }
  0xad   :  { %659 = shalt.err (%p872_p9)  }
  0xae   :  { %661 = vsyncmov [#allocation3 + $0x1] }
  0xb1   :  { %s662_s28 = vpop.sfrf %661 }
  0xb2   :  { %p873_p13 = scmp.ne.s32.totalorder %s662_s28, 0 }
  0xb4   :  { %666 = shalt.err (%p873_p13)  }
  0xb5   :  { %668 = vsyncmov [#allocation3 + $0x2] }
  0xb8   :  { %s669_s16 = vpop.sfrf %668 }
  0xb9   :  { %p874_p10 = scmp.ne.s32.totalorder %s669_s16, 0 }
  0xbb   :  { %673 = shalt.err (%p874_p10)  }
  0xbc   :  { %675 = vsyncmov [#allocation3 + $0x3] }
  0xbf   :  { %s676_s29 = vpop.sfrf %675 }
  0xc0   :  { %p875_p11 = scmp.ne.s32.totalorder %s676_s29, 0 }
  0xc2   :  { %680 = shalt.err (%p875_p11)  }
  0xc3   :  { %682 = vsyncmov [#allocation3 + $0x4] }
  0xc6   :  { %s683_s21 = vpop.sfrf %682 }
  0xc7   :  { %p876_p12 = scmp.ne.s32.totalorder %s683_s21, 0 }
  0xc9   :  { %687 = shalt.err (%p876_p12)  }
  0xca   :  { %689 = vsyncmov [#allocation3 + $0x5] }
  0xcd   :  { %s690_s1 = vpop.sfrf %689 }
  0xce   :  { %p877_p0 = scmp.ne.s32.totalorder %s690_s1, 0 }
  0xd0   :  { %694 = shalt.err (%p877_p0)  }
  0xd1   :  { %696 = vsyncmov [#allocation3 + $0x6] }
  0xd4   :  { %s697_s2 = vpop.sfrf %696 }
  0xd5   :  { %p878_p1 = scmp.ne.s32.totalorder %s697_s2, 0 }
  0xd7   :  { %701 = shalt.err (%p878_p1)  }
  0xd8   :  { %703 = vsyncmov [#allocation3 + $0x7] }
  0xdb   :  { %s704_s3 = vpop.sfrf %703 }
  0xdc   :  { %p879_p2 = scmp.ne.s32.totalorder %s704_s3, 0 }
  0xde   :  { %708 = shalt.err (%p879_p2)  }

</bundles_post_ra>
